<compile_context>
chip_gen: v7x
topology: tpu7x:2x2x1
jax: 0.10.0
libtpu: 0.0.40
codegen_flags: <defaults>
</compile_context>

<pallas_src>
import functools

import jax
import jax.numpy as jnp
from jax import lax
from jax.experimental import pallas as pl
from jax.experimental.pallas import tpu as pltpu

KSIZE = 7
PAD = 3
SUBLANE = 8
_INV_SQRT2 = 0.7071067811865476
_SQRT_2_OVER_PI = 0.7978845608028654


def _round_up(x, m):
    return (x + m - 1) // m * m


# --------------------------------------------------------------------------- #
# Kernel
# --------------------------------------------------------------------------- #
def _convnext_kernel(x_ref, halo_ref, wdw_ref, bdw_ref, w1_ref, b1_ref,
                     w2_ref, b2_ref, o_ref, xwin_ref, *,
                     seq_len, seq_tile, inv_c, approximate_gelu):
    # x_ref:    (TL, C)   centre tile, channels last, native dtype
    # halo_ref: (16, C)   rows 5..7 = 3 rows preceding the tile,
    #                     rows 8..10 = 3 rows following the tile (zeros at ends)
    # o_ref:    (TL, C)
    TL, C = o_ref.shape

    # Ragged last tile: rows with global index >= L hold unspecified data ->
    # zero them so the depthwise-conv taps of the last valid rows are exact
    # (matches the Conv1d zero padding).
    row = pl.program_id(1) * seq_tile + lax.broadcasted_iota(jnp.int32, (TL, C), 0)
    xc = jnp.where(row < seq_len, x_ref[...].astype(jnp.float32), 0.0)

    # Assemble the halo window in VMEM scratch (all stores sublane aligned):
    #   rows [0, 8)          : lo halo (valid rows 5..7)
    #   rows [8, 8 + TL)     : centre tile
    #   rows [8+TL, 8+TL+8)  : hi halo (valid rows 0..2)
    xwin_ref[pl.ds(0, SUBLANE), :] = halo_ref[pl.ds(0, SUBLANE), :].astype(jnp.float32)
    xwin_ref[pl.ds(SUBLANE, TL), :] = xc
    xwin_ref[pl.ds(SUBLANE + TL, SUBLANE), :] = (
        halo_ref[pl.ds(SUBLANE, SUBLANE), :].astype(jnp.float32))

    # Depthwise conv1d (kernel 7, pad 3, groups=C); output row r uses window
    # rows [5 + r, 11 + r] -> tap k reads the TL-row slice starting at 5 + k.
    acc = wdw_ref[pl.ds(0, 1), :] * xwin_ref[pl.ds(SUBLANE - PAD, TL), :]
    for k in range(1, KSIZE):                                  # static unroll
        acc = acc + wdw_ref[pl.ds(k, 1), :] * xwin_ref[pl.ds(SUBLANE - PAD + k, TL), :]
    acc = acc + bdw_ref[...]

    # LayerNorm over the true channel count (two-pass variance for robustness).
    mu = jnp.sum(acc, axis=-1, keepdims=True) * inv_c
    d = acc - mu
    var = jnp.sum(d * d, axis=-1, keepdims=True) * inv_c
    xn = d * lax.rsqrt(var + 1e-5)
    # LayerNorm affine and layer-scale gamma are folded into w1/b1 and w2/b2.

    # Pointwise conv 1: C -> 4C (bf16 MXU inputs, f32 accumulate).
    h = jnp.dot(xn.astype(jnp.bfloat16), w1_ref[...],
                preferred_element_type=jnp.float32) + b1_ref[...]

    if approximate_gelu:
        # tanh formulation -> EUP slot (frees VALU when MXU-bound).
        h = 0.5 * h * (1.0 + jnp.tanh(_SQRT_2_OVER_PI * (h + 0.044715 * h * h * h)))
    else:
        # Exact erf, matching nn.GELU() default semantics.
        h = 0.5 * h * (1.0 + lax.erf(h * _INV_SQRT2))

    # Pointwise conv 2: 4C -> C.
    z = jnp.dot(h.astype(jnp.bfloat16), w2_ref[...],
                preferred_element_type=jnp.float32) + b2_ref[...]

    # Residual (DropPath == identity in eval).  Invalid rows are masked on write.
    o_ref[...] = (xc + z).astype(o_ref.dtype)


# --------------------------------------------------------------------------- #
# Wrapper helpers
# --------------------------------------------------------------------------- #
def _fold_params(params):
    """Fold LN affine into pwconv1 and gamma into pwconv2 (exact in f32)."""
    dw_w = params["dw_w"].astype(jnp.float32)                    # (7, C)
    dw_b = params["dw_b"].astype(jnp.float32).reshape(1, -1)     # (1, C)
    ln_w = params["ln_w"].astype(jnp.float32).reshape(1, -1)
    ln_b = params["ln_b"].astype(jnp.float32).reshape(1, -1)
    w1 = params["w1"].astype(jnp.float32)                        # (C, H)
    b1 = params["b1"].astype(jnp.float32).reshape(1, -1)         # (1, H)
    w2 = params["w2"].astype(jnp.float32)                        # (H, C)
    b2 = params["b2"].astype(jnp.float32).reshape(1, -1)         # (1, C)
    gamma = params["gamma"].astype(jnp.float32).reshape(1, -1)   # (1, C)

    w1f = (w1 * ln_w.T).astype(jnp.bfloat16)                     # (C, H)
    b1f = jnp.dot(ln_b, w1, precision=lax.Precision.HIGHEST) + b1
    w2f = (w2 * gamma).astype(jnp.bfloat16)                      # (H, C)
    b2f = b2 * gamma

    wdw = jnp.pad(dw_w, ((0, SUBLANE - KSIZE), (0, 0)))          # (8, C)
    return wdw, dw_b, w1f, b1f, w2f, b2f


def _build_halo(x, TL, nT):
    """Per-tile 3-row lo/hi halos embedded in a sublane-aligned (16, C) block."""
    N, L, C = x.shape
    dt = x.dtype
    z5 = jnp.zeros((N, SUBLANE - PAD, C), dt)
    z3 = jnp.zeros((N, PAD, C), dt)
    blocks = []
    for t in range(nT):
        s = t * TL
        lo = z3 if s == 0 else x[:, s - PAD:s, :]
        hs, he = min(s + TL, L), min(s + TL + PAD, L)
        if he > hs:
            hi = x[:, hs:he, :]
            if he - hs < PAD:
                hi = jnp.concatenate(
                    [hi, jnp.zeros((N, PAD - (he - hs), C), dt)], axis=1)
        else:
            hi = z3
        # rows 0..4 zero | 5..7 lo | 8..10 hi | 11..15 zero
        blocks.append(jnp.concatenate([z5, lo, hi, z5], axis=1))
    return jnp.stack(blocks, axis=1)                             # (N, nT, 16, C)


def _estimate_vmem_bytes(TL, C, H, in_itemsize):
    x_io = 2 * 2 * TL * C * in_itemsize                  # in + out, double-buffered
    halo = 2 * 2 * SUBLANE * C * in_itemsize
    weights = 2 * C * H * 2 + (SUBLANE + 2) * C * 4 + H * 4
    scratch = (TL + 2 * SUBLANE) * C * 4
    interm = TL * H * 4 + 4 * TL * C * 4                 # hidden + a few f32 tiles
    return x_io + halo + weights + scratch + interm


def _vmem_capacity_bytes():
    try:
        info = pltpu.get_tpu_info()
        return int(getattr(info, "vmem_capacity_bytes", 64 * 1024 * 1024))
    except Exception:
        return 64 * 1024 * 1024                          # v7x-safe fallback


def _pick_seq_tile(N, L, C, seq_tile, vmem_budget, in_itemsize):
    H = 4 * C
    if seq_tile is None:
        seq_tile = 512 if C <= 512 else 256              # shape-aware default
    TL = max(SUBLANE, min(_round_up(seq_tile, SUBLANE), _round_up(L, SUBLANE)))
    while TL > SUBLANE and _estimate_vmem_bytes(TL, C, H, in_itemsize) > vmem_budget:
        TL = max(SUBLANE, _round_up(TL // 2, SUBLANE))
    if N == 1 and L > 2 * SUBLANE:
        # Expose >= 2 units of parallel work for v7x's two TensorCores.
        TL = min(TL, max(SUBLANE, _round_up(pl.cdiv(L, 2), SUBLANE)))
    return TL


# --------------------------------------------------------------------------- #
# Public entry points
# --------------------------------------------------------------------------- #
def convnext_block_1d_nlc(x, params, *, seq_tile=None, approximate_gelu=False):
    """ConvNeXtBlock1D on channels-last activations.  x: (N, L, C) -> (N, L, C).

    No wrapper layout passes: activations stream in their native dtype and
    layout; the only auxiliary HBM traffic is the tiny per-tile halo array.
    """
    N, L, C = x.shape
    H = 4 * C
    in_itemsize = jnp.dtype(x.dtype).itemsize

    cap = _vmem_capacity_bytes()
    TL = _pick_seq_tile(N, L, C, seq_tile, int(cap * 0.6), in_itemsize)
    nT = pl.cdiv(L, TL)
    est = _estimate_vmem_bytes(TL, C, H, in_itemsize)
    vmem_limit = int(min(cap * 0.85, max(est * 1.5, 32 * 1024 * 1024)))

    wdw, bdw, w1f, b1f, w2f, b2f = _fold_params(params)
    halo = _build_halo(x, TL, nT)

    kernel = functools.partial(
        _convnext_kernel, seq_len=L, seq_tile=TL, inv_c=1.0 / float(C),
        approximate_gelu=approximate_gelu)

    def wspec(shape):
        nd = len(shape)
        return pl.BlockSpec(shape, lambda n, t, _nd=nd: (0,) * _nd,
                            pipeline_mode=pl.Buffered(1))

    tile_spec = pl.BlockSpec((None, TL, C), lambda n, t: (n, t, 0))
    halo_spec = pl.BlockSpec((None, None, 2 * SUBLANE, C), lambda n, t: (n, t, 0, 0))

    flops = N * L * (4 * C * H + 2 * KSIZE * C + 12 * C)
    transc = N * L * (H + 1)
    bytes_acc = (2 * N * L * C * in_itemsize
                 + N * nT * 2 * SUBLANE * C * in_itemsize
                 + 2 * C * H * 2 + (SUBLANE + 2) * C * 4 + H * 4)

    return pl.pallas_call(
        kernel,
        out_shape=jax.ShapeDtypeStruct((N, L, C), x.dtype),
        grid=(N, nT),
        in_specs=[
            tile_spec,            # x centre tile (double-buffered)
            halo_spec,            # 3 preceding + 3 following rows, one DMA
            wspec(wdw.shape),
            wspec(bdw.shape),
            wspec(w1f.shape),
            wspec(b1f.shape),
            wspec(w2f.shape),
            wspec(b2f.shape),
        ],
        out_specs=tile_spec,
        scratch_shapes=[pltpu.VMEM((TL + 2 * SUBLANE, C), jnp.float32)],
        compiler_params=pltpu.CompilerParams(
            dimension_semantics=("parallel", "parallel"),
            vmem_limit_bytes=vmem_limit),
        cost_estimate=pl.CostEstimate(
            flops=int(flops), transcendentals=int(transc),
            bytes_accessed=int(bytes_acc)),
    )(x, halo, wdw, bdw, w1f, b1f, w2f, b2f)


def convnext_block_1d(x_ncl, params, *, seq_tile=None, approximate_gelu=False):
    """PyTorch-layout interface.  x: (N, C, L) -> (N, C, L).

    When stacking many blocks, keep activations channels-last and call
    `convnext_block_1d_nlc` directly so the two transposes here are paid once
    per model boundary instead of per block.
    """
    assert x_ncl.ndim == 3
    x = jnp.transpose(x_ncl, (0, 2, 1))                  # (N, L, C)
    y = convnext_block_1d_nlc(x, params, seq_tile=seq_tile,
                              approximate_gelu=approximate_gelu)
    return jnp.transpose(y, (0, 2, 1))


# --------------------------------------------------------------------------- #
# Params / reference / test
# --------------------------------------------------------------------------- #
def init_params(key, dim, layer_scale_init_value=1e-6):
    ks = jax.random.split(key, 10)
    hidden = 4 * dim
    dw_w = jax.random.normal(ks[0], (KSIZE, dim), jnp.float32) * 0.1
    dw_b = jax.random.normal(ks[1], (1, dim), jnp.float32) * 0.1
    ln_w = 1.0 + 0.1 * jax.random.normal(ks[2], (1, dim), jnp.float32)
    ln_b = 0.1 * jax.random.normal(ks[3], (1, dim), jnp.float32)
    w1 = jax.random.normal(ks[4], (dim, hidden), jnp.float32) * 0.1
    b1 = jax.random.normal(ks[5], (1, hidden), jnp.float32) * 0.1
    w2 = jax.random.normal(ks[6], (hidden, dim), jnp.float32) * 0.1
    b2 = jax.random.normal(ks[7], (1, dim), jnp.float32) * 0.1
    gamma = layer_scale_init_value * jnp.ones((1, dim), jnp.float32)
    return dict(dw_w=dw_w, dw_b=dw_b, ln_w=ln_w, ln_b=ln_b,
                w1=w1, b1=b1, w2=w2, b2=b2, gamma=gamma)


def reference(x_ncl, p):
    # Pure-JAX f32 reference mirroring the PyTorch forward (unfolded params).
    x = jnp.transpose(x_ncl, (0, 2, 1))                  # (N, L, C)
    L = x.shape[1]
    xpad = jnp.pad(x, ((0, 0), (PAD, PAD), (0, 0)))
    acc = jnp.zeros_like(x) + p["dw_b"]
    for k in range(KSIZE):
        acc = acc + xpad[:, k:k + L, :] * p["dw_w"][k][None, None, :]
    mu = jnp.mean(acc, -1, keepdims=True)
    var = jnp.mean((acc - mu) ** 2, -1, keepdims=True)
    xn = (acc - mu) / jnp.sqrt(var + 1e-5) * p["ln_w"] + p["ln_b"]
    h = xn @ p["w1"] + p["b1"]
    h = 0.5 * h * (1.0 + lax.erf(h / jnp.sqrt(2.0)))
    z = (h @ p["w2"] + p["b2"]) * p["gamma"]
    return jnp.transpose(x + z, (0, 2, 1))


if __name__ == "__main__":
    N, C, L = 2, 8, 16
    key = jax.random.PRNGKey(0)
    kx, kp = jax.random.split(key)
    x = jax.random.normal(kx, (N, C, L), jnp.float32)
    # layer_scale_init_value=1.0 so the MLP branch is visible in the check
    # (the module default 1e-6 would make the output residual-dominated).
    params = init_params(kp, C, layer_scale_init_value=1.0)

    # seq_tile=8 -> 2 sequence tiles of 8 rows each: exercises the halo path.
    out = jax.block_until_ready(convnext_block_1d(x, params, seq_tile=8))
    ref = reference(x, params)

    assert out.shape == (N, C, L)
    err = float(jnp.max(jnp.abs(out - ref)))
    # bf16 MXU inputs (f32 accumulate) + folded-weight bf16 rounding -> small
    # deviation vs the pure-f32 reference.
    assert err < 2e-2, f"mismatch vs reference: max abs err = {err}"
    print("KERNEL_OK")
</pallas_src>

<mosaic_0001>
module attributes {stable_mosaic.version = 11 : i64} {
  func.func @_convnext_kernel(%arg0: i32, %arg1: i32, %arg2: memref<1x8x8xf32, #tpu.memory_space<vmem>>, %arg3: memref<1x1x16x8xf32, #tpu.memory_space<vmem>>, %arg4: memref<8x8xf32, #tpu.memory_space<vmem>>, %arg5: memref<1x8xf32, #tpu.memory_space<vmem>>, %arg6: memref<8x32xbf16, #tpu.memory_space<vmem>>, %arg7: memref<1x32xf32, #tpu.memory_space<vmem>>, %arg8: memref<32x8xbf16, #tpu.memory_space<vmem>>, %arg9: memref<1x8xf32, #tpu.memory_space<vmem>>, %arg10: memref<1x8x8xf32, #tpu.memory_space<vmem>>, %arg11: memref<24x8xf32, #tpu.memory_space<vmem>>) attributes {dimension_semantics = [#tpu.dimension_semantics<parallel>, #tpu.dimension_semantics<parallel>], iteration_bounds = array<i64: 2, 2>, scalar_prefetch = 0 : i64, scratch_operands = 1 : i64, tpu.core_type = #tpu.core_type<tc>, window_params = [{transform_indices = @transform_0, window_bounds = array<i64: 1, 8, 8>}, {transform_indices = @transform_1, window_bounds = array<i64: 1, 1, 16, 8>}, {pipeline_mode = #tpu.pipeline_mode<synchronous>, transform_indices = @transform_2, window_bounds = array<i64: 8, 8>}, {pipeline_mode = #tpu.pipeline_mode<synchronous>, transform_indices = @transform_3, window_bounds = array<i64: 1, 8>}, {pipeline_mode = #tpu.pipeline_mode<synchronous>, transform_indices = @transform_4, window_bounds = array<i64: 8, 32>}, {pipeline_mode = #tpu.pipeline_mode<synchronous>, transform_indices = @transform_5, window_bounds = array<i64: 1, 32>}, {pipeline_mode = #tpu.pipeline_mode<synchronous>, transform_indices = @transform_6, window_bounds = array<i64: 32, 8>}, {pipeline_mode = #tpu.pipeline_mode<synchronous>, transform_indices = @transform_7, window_bounds = array<i64: 1, 8>}, {transform_indices = @transform_8, window_bounds = array<i64: 1, 8, 8>}]} {
    %c8_i32 = arith.constant 8 : i32
    %0 = arith.muli %arg1, %c8_i32 : i32
    %1 = tpu.iota {dimensions = array<i32: 0>} : vector<8x8xi32>
    %2 = vector.broadcast %0 : i32 to vector<8x8xi32>
    %3 = arith.addi %2, %1 : vector<8x8xi32>
    %c16_i32 = arith.constant 16 : i32
    %4 = vector.broadcast %c16_i32 : i32 to vector<8x8xi32>
    %5 = arith.cmpi slt, %3, %4 : vector<8x8xi32>
    %c0 = arith.constant 0 : index
    %c0_0 = arith.constant 0 : index
    %c0_1 = arith.constant 0 : index
    %6 = vector.load %arg2[%c0, %c0_0, %c0_1] : memref<1x8x8xf32, #tpu.memory_space<vmem>>, vector<1x8x8xf32>
    %7 = vector.shape_cast %6 : vector<1x8x8xf32> to vector<8x8xf32>
    %cst = arith.constant 0.000000e+00 : f32
    %8 = vector.broadcast %cst : f32 to vector<8x8xf32>
    %9 = arith.select %5, %7, %8 : vector<8x8xi1>, vector<8x8xf32>
    %c0_2 = arith.constant 0 : index
    %c0_3 = arith.constant 0 : index
    %c0_4 = arith.constant 0 : index
    %c0_5 = arith.constant 0 : index
    %10 = vector.load %arg3[%c0_2, %c0_3, %c0_4, %c0_5] : memref<1x1x16x8xf32, #tpu.memory_space<vmem>>, vector<1x1x8x8xf32>
    %11 = vector.shape_cast %10 : vector<1x1x8x8xf32> to vector<8x8xf32>
    %c0_6 = arith.constant 0 : index
    %c0_7 = arith.constant 0 : index
    %12 = vector.load %arg11[%c0_6, %c0_7] : memref<24x8xf32, #tpu.memory_space<vmem>>, vector<8x8xf32>
    tpu.vector_store %arg11[%c0_6, %c0_7], %11 {strides = array<i32>} : memref<24x8xf32, #tpu.memory_space<vmem>>, vector<8x8xf32>,
    %c8 = arith.constant 8 : index
    %c0_8 = arith.constant 0 : index
    %13 = vector.load %arg11[%c8, %c0_8] : memref<24x8xf32, #tpu.memory_space<vmem>>, vector<8x8xf32>
    tpu.vector_store %arg11[%c8, %c0_8], %9 {strides = array<i32>} : memref<24x8xf32, #tpu.memory_space<vmem>>, vector<8x8xf32>,
    %c0_9 = arith.constant 0 : index
    %c0_10 = arith.constant 0 : index
    %c8_11 = arith.constant 8 : index
    %c0_12 = arith.constant 0 : index
    %14 = vector.load %arg3[%c0_9, %c0_10, %c8_11, %c0_12] : memref<1x1x16x8xf32, #tpu.memory_space<vmem>>, vector<1x1x8x8xf32>
    %15 = vector.shape_cast %14 : vector<1x1x8x8xf32> to vector<8x8xf32>
    %c16 = arith.constant 16 : index
    %c0_13 = arith.constant 0 : index
    %16 = vector.load %arg11[%c16, %c0_13] : memref<24x8xf32, #tpu.memory_space<vmem>>, vector<8x8xf32>
    tpu.vector_store %arg11[%c16, %c0_13], %15 {strides = array<i32>} : memref<24x8xf32, #tpu.memory_space<vmem>>, vector<8x8xf32>,
    %c0_14 = arith.constant 0 : index
    %c0_15 = arith.constant 0 : index
    %17 = vector.load %arg4[%c0_14, %c0_15] : memref<8x8xf32, #tpu.memory_space<vmem>>, vector<1x8xf32>
    %c5 = arith.constant 5 : index
    %c0_16 = arith.constant 0 : index
    %18 = vector.load %arg11[%c5, %c0_16] : memref<24x8xf32, #tpu.memory_space<vmem>>, vector<8x8xf32>
    %19 = vector.broadcast %17 : vector<1x8xf32> to vector<8x8xf32>
    %20 = arith.mulf %19, %18 : vector<8x8xf32>
    %c1 = arith.constant 1 : index
    %c0_17 = arith.constant 0 : index
    %21 = vector.load %arg4[%c1, %c0_17] : memref<8x8xf32, #tpu.memory_space<vmem>>, vector<1x8xf32>
    %c6 = arith.constant 6 : index
    %c0_18 = arith.constant 0 : index
    %22 = vector.load %arg11[%c6, %c0_18] : memref<24x8xf32, #tpu.memory_space<vmem>>, vector<8x8xf32>
    %23 = vector.broadcast %21 : vector<1x8xf32> to vector<8x8xf32>
    %24 = arith.mulf %23, %22 : vector<8x8xf32>
    %25 = arith.addf %20, %24 : vector<8x8xf32>
    %c2 = arith.constant 2 : index
    %c0_19 = arith.constant 0 : index
    %26 = vector.load %arg4[%c2, %c0_19] : memref<8x8xf32, #tpu.memory_space<vmem>>, vector<1x8xf32>
    %c7 = arith.constant 7 : index
    %c0_20 = arith.constant 0 : index
    %27 = vector.load %arg11[%c7, %c0_20] : memref<24x8xf32, #tpu.memory_space<vmem>>, vector<8x8xf32>
    %28 = vector.broadcast %26 : vector<1x8xf32> to vector<8x8xf32>
    %29 = arith.mulf %28, %27 : vector<8x8xf32>
    %30 = arith.addf %25, %29 : vector<8x8xf32>
    %c3 = arith.constant 3 : index
    %c0_21 = arith.constant 0 : index
    %31 = vector.load %arg4[%c3, %c0_21] : memref<8x8xf32, #tpu.memory_space<vmem>>, vector<1x8xf32>
    %c8_22 = arith.constant 8 : index
    %c0_23 = arith.constant 0 : index
    %32 = vector.load %arg11[%c8_22, %c0_23] : memref<24x8xf32, #tpu.memory_space<vmem>>, vector<8x8xf32>
    %33 = vector.broadcast %31 : vector<1x8xf32> to vector<8x8xf32>
    %34 = arith.mulf %33, %32 : vector<8x8xf32>
    %35 = arith.addf %30, %34 : vector<8x8xf32>
    %c4 = arith.constant 4 : index
    %c0_24 = arith.constant 0 : index
    %36 = vector.load %arg4[%c4, %c0_24] : memref<8x8xf32, #tpu.memory_space<vmem>>, vector<1x8xf32>
    %c9 = arith.constant 9 : index
    %c0_25 = arith.constant 0 : index
    %37 = vector.load %arg11[%c9, %c0_25] : memref<24x8xf32, #tpu.memory_space<vmem>>, vector<8x8xf32>
    %38 = vector.broadcast %36 : vector<1x8xf32> to vector<8x8xf32>
    %39 = arith.mulf %38, %37 : vector<8x8xf32>
    %40 = arith.addf %35, %39 : vector<8x8xf32>
    %c5_26 = arith.constant 5 : index
    %c0_27 = arith.constant 0 : index
    %41 = vector.load %arg4[%c5_26, %c0_27] : memref<8x8xf32, #tpu.memory_space<vmem>>, vector<1x8xf32>
    %c10 = arith.constant 10 : index
    %c0_28 = arith.constant 0 : index
    %42 = vector.load %arg11[%c10, %c0_28] : memref<24x8xf32, #tpu.memory_space<vmem>>, vector<8x8xf32>
    %43 = vector.broadcast %41 : vector<1x8xf32> to vector<8x8xf32>
    %44 = arith.mulf %43, %42 : vector<8x8xf32>
    %45 = arith.addf %40, %44 : vector<8x8xf32>
    %c6_29 = arith.constant 6 : index
    %c0_30 = arith.constant 0 : index
    %46 = vector.load %arg4[%c6_29, %c0_30] : memref<8x8xf32, #tpu.memory_space<vmem>>, vector<1x8xf32>
    %c11 = arith.constant 11 : index
    %c0_31 = arith.constant 0 : index
    %47 = vector.load %arg11[%c11, %c0_31] : memref<24x8xf32, #tpu.memory_space<vmem>>, vector<8x8xf32>
    %48 = vector.broadcast %46 : vector<1x8xf32> to vector<8x8xf32>
    %49 = arith.mulf %48, %47 : vector<8x8xf32>
    %50 = arith.addf %45, %49 : vector<8x8xf32>
    %c0_32 = arith.constant 0 : index
    %c0_33 = arith.constant 0 : index
    %51 = vector.load %arg5[%c0_32, %c0_33] : memref<1x8xf32, #tpu.memory_space<vmem>>, vector<1x8xf32>
    %52 = vector.broadcast %51 : vector<1x8xf32> to vector<8x8xf32>
    %53 = arith.addf %50, %52 : vector<8x8xf32>
    %cst_34 = arith.constant dense<0.000000e+00> : vector<8xf32>
    %54 = vector.multi_reduction <add>, %53, %cst_34 [1] : vector<8x8xf32> to vector<8xf32>
    %55 = vector.shape_cast %54 : vector<8xf32> to vector<8x1xf32>
    %cst_35 = arith.constant 1.250000e-01 : f32
    %56 = vector.broadcast %cst_35 : f32 to vector<8x1xf32>
    %57 = arith.mulf %55, %56 : vector<8x1xf32>
    %58 = vector.broadcast %57 : vector<8x1xf32> to vector<8x8xf32>
    %59 = arith.subf %53, %58 : vector<8x8xf32>
    %60 = arith.mulf %59, %59 : vector<8x8xf32>
    %cst_36 = arith.constant dense<0.000000e+00> : vector<8xf32>
    %61 = vector.multi_reduction <add>, %60, %cst_36 [1] : vector<8x8xf32> to vector<8xf32>
    %62 = vector.shape_cast %61 : vector<8xf32> to vector<8x1xf32>
    %cst_37 = arith.constant 1.250000e-01 : f32
    %63 = vector.broadcast %cst_37 : f32 to vector<8x1xf32>
    %64 = arith.mulf %62, %63 : vector<8x1xf32>
    %cst_38 = arith.constant 9.99999974E-6 : f32
    %65 = vector.broadcast %cst_38 : f32 to vector<8x1xf32>
    %66 = arith.addf %64, %65 : vector<8x1xf32>
    %67 = math.rsqrt %66 : vector<8x1xf32>
    %68 = vector.broadcast %67 : vector<8x1xf32> to vector<8x8xf32>
    %69 = arith.mulf %59, %68 : vector<8x8xf32>
    %70 = arith.truncf %69 : vector<8x8xf32> to vector<8x8xbf16>
    %c0_39 = arith.constant 0 : index
    %c0_40 = arith.constant 0 : index
    %71 = vector.load %arg6[%c0_39, %c0_40] : memref<8x32xbf16, #tpu.memory_space<vmem>>, vector<8x32xbf16>
    %cst_41 = arith.constant dense<0.000000e+00> : vector<8x32xf32>
    %72 = tpu.matmul %70, %71, %cst_41 {dimension_numbers = #tpu.dot_dimension_numbers<[1], [0], [0], [1], [0, 0, 1, 1], [], []>} : vector<8x8xbf16>, vector<8x32xbf16>, vector<8x32xf32> -> vector<8x32xf32>
    %c0_42 = arith.constant 0 : index
    %c0_43 = arith.constant 0 : index
    %73 = vector.load %arg7[%c0_42, %c0_43] : memref<1x32xf32, #tpu.memory_space<vmem>>, vector<1x32xf32>
    %74 = vector.broadcast %73 : vector<1x32xf32> to vector<8x32xf32>
    %75 = arith.addf %72, %74 : vector<8x32xf32>
    %cst_44 = arith.constant 5.000000e-01 : f32
    %76 = vector.broadcast %cst_44 : f32 to vector<8x32xf32>
    %77 = arith.mulf %76, %75 : vector<8x32xf32>
    %cst_45 = arith.constant 0.707106769 : f32
    %78 = vector.broadcast %cst_45 : f32 to vector<8x32xf32>
    %79 = arith.mulf %75, %78 : vector<8x32xf32>
    %80 = math.erf %79 : vector<8x32xf32>
    %cst_46 = arith.constant 1.000000e+00 : f32
    %81 = vector.broadcast %cst_46 : f32 to vector<8x32xf32>
    %82 = arith.addf %81, %80 : vector<8x32xf32>
    %83 = arith.mulf %77, %82 : vector<8x32xf32>
    %84 = arith.truncf %83 : vector<8x32xf32> to vector<8x32xbf16>
    %c0_47 = arith.constant 0 : index
    %c0_48 = arith.constant 0 : index
    %85 = vector.load %arg8[%c0_47, %c0_48] : memref<32x8xbf16, #tpu.memory_space<vmem>>, vector<32x8xbf16>
    %cst_49 = arith.constant dense<0.000000e+00> : vector<8x8xf32>
    %86 = tpu.matmul %84, %85, %cst_49 {dimension_numbers = #tpu.dot_dimension_numbers<[1], [0], [0], [1], [0, 0, 1, 1], [], []>} : vector<8x32xbf16>, vector<32x8xbf16>, vector<8x8xf32> -> vector<8x8xf32>
    %c0_50 = arith.constant 0 : index
    %c0_51 = arith.constant 0 : index
    %87 = vector.load %arg9[%c0_50, %c0_51] : memref<1x8xf32, #tpu.memory_space<vmem>>, vector<1x8xf32>
    %88 = vector.broadcast %87 : vector<1x8xf32> to vector<8x8xf32>
    %89 = arith.addf %86, %88 : vector<8x8xf32>
    %90 = arith.addf %9, %89 : vector<8x8xf32>
    %c0_52 = arith.constant 0 : index
    %c0_53 = arith.constant 0 : index
    %c0_54 = arith.constant 0 : index
    %91 = vector.load %arg10[%c0_52, %c0_53, %c0_54] : memref<1x8x8xf32, #tpu.memory_space<vmem>>, vector<1x8x8xf32>
    %92 = vector.shape_cast %91 : vector<1x8x8xf32> to vector<8x8xf32>
    %93 = vector.shape_cast %90 : vector<8x8xf32> to vector<1x8x8xf32>
    tpu.vector_store %arg10[%c0_52, %c0_53, %c0_54], %93 {strides = array<i32>} : memref<1x8x8xf32, #tpu.memory_space<vmem>>, vector<1x8x8xf32>,
    return
  }
  func.func @transform_0(%arg0: i32, %arg1: i32) -> (i32, i32, i32) {
    %c0_i32 = arith.constant 0 : i32
    %c0_i32_0 = arith.constant 0 : i32
    return %arg0, %arg1, %c0_i32 : i32, i32, i32
  }
  func.func @transform_1(%arg0: i32, %arg1: i32) -> (i32, i32, i32, i32) {
    %c0_i32 = arith.constant 0 : i32
    %c0_i32_0 = arith.constant 0 : i32
    %c0_i32_1 = arith.constant 0 : i32
    return %arg0, %arg1, %c0_i32, %c0_i32_0 : i32, i32, i32, i32
  }
  func.func @transform_2(%arg0: i32, %arg1: i32) -> (i32, i32) {
    %c0_i32 = arith.constant 0 : i32
    %c0_i32_0 = arith.constant 0 : i32
    %c0_i32_1 = arith.constant 0 : i32
    return %c0_i32, %c0_i32_0 : i32, i32
  }
  func.func @transform_3(%arg0: i32, %arg1: i32) -> (i32, i32) {
    %c0_i32 = arith.constant 0 : i32
    %c0_i32_0 = arith.constant 0 : i32
    %c0_i32_1 = arith.constant 0 : i32
    return %c0_i32, %c0_i32_0 : i32, i32
  }
  func.func @transform_4(%arg0: i32, %arg1: i32) -> (i32, i32) {
    %c0_i32 = arith.constant 0 : i32
    %c0_i32_0 = arith.constant 0 : i32
    %c0_i32_1 = arith.constant 0 : i32
    return %c0_i32, %c0_i32_0 : i32, i32
  }
  func.func @transform_5(%arg0: i32, %arg1: i32) -> (i32, i32) {
    %c0_i32 = arith.constant 0 : i32
    %c0_i32_0 = arith.constant 0 : i32
    %c0_i32_1 = arith.constant 0 : i32
    return %c0_i32, %c0_i32_0 : i32, i32
  }
  func.func @transform_6(%arg0: i32, %arg1: i32) -> (i32, i32) {
    %c0_i32 = arith.constant 0 : i32
    %c0_i32_0 = arith.constant 0 : i32
    %c0_i32_1 = arith.constant 0 : i32
    return %c0_i32, %c0_i32_0 : i32, i32
  }
  func.func @transform_7(%arg0: i32, %arg1: i32) -> (i32, i32) {
    %c0_i32 = arith.constant 0 : i32
    %c0_i32_0 = arith.constant 0 : i32
    %c0_i32_1 = arith.constant 0 : i32
    return %c0_i32, %c0_i32_0 : i32, i32
  }
  func.func @transform_8(%arg0: i32, %arg1: i32) -> (i32, i32, i32) {
    %c0_i32 = arith.constant 0 : i32
    %c0_i32_0 = arith.constant 0 : i32
    return %arg0, %arg1, %c0_i32 : i32, i32, i32
  }
}

</mosaic_0001>

<bundles_post_ra>
// kernel: tpu_custom_call.1
= control target key start
LH: loop header
LB: loop body
LE: loop exit
PB: predicated region body
PF: predicated region fallthrough
CT: control target
= control target key end

     0   :  { %s883_s27 = smov 0   ;;  %s885_s28 = smov 0   ;;  %s994_s0 = inlined_call_operand.vmem [shape: f32[2,16,8], index: 0, kind: input, shape index: {}]   ;;  %s995_s1 = inlined_call_operand.vmem [shape: f32[2,2,16,8], index: 1, kind: input, shape index: {}]   ;;  %s996_s2 = inlined_call_operand.vmem [shape: f32[8,8], index: 2, kind: input, shape index: {}]   ;;  %s997_s3 = inlined_call_operand.vmem [shape: f32[1,8], index: 3, kind: input, shape index: {}]   ;;  %s998_s4 = inlined_call_operand.vmem [shape: bf16[8,32], index: 4, kind: input, shape index: {}]   ;;  %s999_s5 = inlined_call_operand.vmem [shape: f32[1,32], index: 5, kind: input, shape index: {}]   ;;  %s1000_s6 = inlined_call_operand.vmem [shape: bf16[32,8], index: 6, kind: input, shape index: {}]   ;;  %s1001_s7 = inlined_call_operand.vmem [shape: f32[1,8], index: 7, kind: input, shape index: {}]   ;;  %s1002_s8 = inlined_call_operand.vmem [shape: f32[2,16,8], index: 8, kind: output, shape index: {}]  }
   0x1   :  { %s887_s29 = smov 0   ;;  %s889_s30 = smov 0  }
   0x2   :  { %s891_s9 = smov 0  }
   0x3 LB: > { %s27_s10 = sadd.s32 1, %s826_s29  ;;  %s30_s11 = sadd.s32 1, %s830_s30  ;;  %s834_s9 = sphi %s891_s9, %s18_s9   ;;  %s830_s30 = sphi %s889_s30, %s1006_s30   ;;  %s826_s29 = sphi %s887_s29, %s1005_s29   ;;  %s822_s28 = sphi %s885_s28, %s1004_s28   ;;  %s818_s27 = sphi %s883_s27, %s1003_s27  }
   0x4   : > { %p28_p0 = scmp.ge.s32.totalorder %s27_s10, 2  ;;  %p704_p1 = scmp.ge.s32.totalorder %s834_s9, 1 }
   0x5   : > { %p297_p2 = scmp.lt.s32.totalorder %s834_s9, 5 }
   0x6   : > { %s1008_s10 = smov (%p28_p0, %s27_s10), 0  ;;  %s1010_s11 = smov (!%p28_p0, %s30_s11), %s830_s30 }
   0x7   : > { %p298_p3 = pnand %p704_p1, %p297_p2  ;;  %p32_p4 = scmp.ge.s32.totalorder %s1010_s11, 2 }
   0x8   : > { %p346_p5 = scmp.lt.s32.totalorder (!%p298_p3), %s822_s28, 1  ;;  %p348_p6 = scmp.lt.s32.totalorder (!%p298_p3), %s818_s27, 1  ;;  %v373_v0 = vlaneseq (!%p298_p3)  ;;  %vm381_vm1 = vcmask (!%p298_p3), 64512   ;;  %v713_v8 = vld [vmem:[%s996_s2] ss:$0 sm:$0xff] (!%p298_p3)  ;;  %vm474_vm2 = vcmask (!%p298_p3), 1043456  }
   0x9   : > { %s1012_s11 = smov (%p32_p4, %s1010_s11), 0  ;;  %301 = sbr.rel (%p298_p3) target bundleno = 809 (0x329), region = 52 }
   0xa   : > { %s712_s12 = sshll.u32 (!%p298_p3), %s818_s27, 3  ;;  %v374_v1 = vshrl.u32 (!%p298_p3), %v373_v0, 7  ;;  %v714_v9 = vld [vmem:[%s996_s2 + $0x1] ss:$0 sm:$0xff] (!%p298_p3)  ;;  %v715_v10 = vld [vmem:[%s996_s2 + $0x2] ss:$0 sm:$0xff] (!%p298_p3) }
   0xb   : > { %v375_v2 = vstv (!%p298_p3), %s712_s12  ;;  %v716_v11 = vld [vmem:[%s996_s2 + $0x3] ss:$0 sm:$0xff] (!%p298_p3)  ;;  %v717_v19 = vld [vmem:[%s996_s2 + $0x4] ss:$0 sm:$0xff] (!%p298_p3)  ;;  %v718_v23 = vld [vmem:[%s996_s2 + $0x5] ss:$0 sm:$0xff] (!%p298_p3) }
   0xc   : > { %v376_v3 = vadd.s32 (!%p298_p3), %v375_v2, %v374_v1  ;;  %v719_v27 = vld [vmem:[%s996_s2 + $0x6] ss:$0 sm:$0xff] (!%p298_p3)  ;;  %v720_v34 = vld [vmem:[%s997_s3] ss:$0 sm:$0xff] (!%p298_p3)  ;;  %v836_v44 = vmov (!%p298_p3), 0.0   ;;  %vm837_vm3 = vmmov (!%p298_p3), 0  }
   0xd   : > { %v463_v43 = vld [vmem:[%s998_s4] sm:$0xf] (!%p298_p3)  ;;  %734 = vmatprep.subr.bf16.mxu0 (!%p298_p3), %v836_v44  ;;  %736 = vmatprep.mubr.msk.bf16.mxu0 (!%p298_p3), %vm837_vm3, %v836_v44  ;;  %v791_v53 = vld [vmem:[%s1000_s6 + $0x8] sm:$0xff] (!%p298_p3)   ;;  %vm547_vm4 = vcmask (!%p298_p3), 261120  }
   0xe   : > { %vm377_vm0 = vcmp.lt.s32.totalorder (!%p298_p3), %v376_v3, 16  ;;  %v476_v45 = vsel (!%p298_p3), %vm474_vm2, %v463_v43, 0  ;;  %740 = vmatprep.subr.bf16.mxu1 (!%p298_p3), %v836_v44  ;;  %744 = vmatprep.mubr.msk.bf16.mxu1 (!%p298_p3), %vm837_vm3, %v836_v44  ;;  %v790_v52 = vld [vmem:[%s1000_s6] sm:$0xff] (!%p298_p3)  }
   0xf   : > { %735 = vmatpush3.bf16.msra.mxu0 (!%p298_p3), %v476_v45  ;;  %741 = vmatpush3.bf16.msra.mxu1 (!%p298_p3), %v790_v52  ;;  %v721_v54 = vld [vmem:[%s999_s5] ss:$0 sm:$0xff] (!%p298_p3) }
  0x10   : > { %s1014_s28 = smov (!%p346_p5, %s822_s28), 1  ;;  %s1016_s27 = smov (!%p348_p6, %s818_s27), 1  ;;  %742 = vmatprep.subr.bf16.mxu1 %v836_v44  ;;  %v723_v2 = vld [vmem:[%s1001_s7] ss:$0 sm:$0xff] }
  0x11   : > { %s705_s13 = sshll.u32 %s1014_s28, 1  ;;  %s708_s14 = sshll.u32 %s1014_s28, 2 }
  0x12   : > { %s913_s15 = sadd.s32 %s705_s13, %s1016_s27  ;;  %s707_s16 = sshll.u32 %s1016_s27, 1 }
  0x13   : > { %s706_s17 = sshll.u32 %s913_s15, 3  ;;  %s360_s18 = sadd.s32 %s708_s14, %s707_s16  ;;  %743 = vmatpush3.bf16.msra.mxu1 %v791_v53 }
  0x14   : > { %s353_s21 = scalar_lea.vmem %s994_s0, %s706_s17  ;;  %s709_s22 = sshll.u32 %s360_s18, 3 }
  0x15   : > { %s362_s25 = scalar_lea.vmem %s995_s1, %s709_s22  ;;  %v378_v4 = vld [vmem:[%s353_s21] sm:$0xff]  ;;  %s370_s24 = scalar_lea.vmem %s1002_s8, %s706_s17 }
  0x16   : > { %v924_v5 = vsel %vm377_vm0, %v378_v4, 0.0  ;;  %v380_v6 = vld [vmem:[%s362_s25] sm:$0xff]  ;;  %v384_v7 = vld [vmem:[%s362_s25 + $0x8] sm:$0xff] }
  0x17   : > { %382 = vst.msk [vmem:[#allocation2] sm:$0xff] %vm381_vm1, %v380_v6  ;;  %383 = vst.msk [vmem:[#allocation2 + $0x8] sm:$0xff] %vm381_vm1, %v924_v5 }
  0x18   : > { %385 = vst.msk [vmem:[#allocation2 + $0x10] sm:$0xff] %vm381_vm1, %v384_v7 }
  0x1e   : > { %v387_v12 = vld [vmem:[#allocation2 + $0x5] sm:$0xff] }
  0x1f   : > { %v394_v13 = vld [vmem:[#allocation2 + $0x6] sm:$0xff]  ;;  %v392_v15 = vmul.f32 %v713_v8, %v387_v12 }
  0x20   : > { %v402_v14 = vld [vmem:[#allocation2 + $0x7] sm:$0xff]  ;;  %v399_v16 = vmul.f32 %v714_v9, %v394_v13 }
  0x21   : > { %v407_v17 = vmul.f32 %v715_v10, %v402_v14  ;;  %v410_v18 = vld [vmem:[#allocation2 + $0x8] sm:$0xff] }
  0x22   : > { %v418_v20 = vld [vmem:[#allocation2 + $0x9] sm:$0xff]  ;;  %v400_v21 = vadd.f32 %v399_v16, %v392_v15  ;;  %v415_v22 = vmul.f32 %v716_v11, %v410_v18 }
  0x23   : > { %v426_v24 = vld [vmem:[#allocation2 + $0xa] sm:$0xff]  ;;  %v423_v26 = vmul.f32 %v717_v19, %v418_v20 }
  0x24   : > { %v408_v25 = vadd.f32 %v407_v17, %v400_v21  ;;  %v434_v28 = vld [vmem:[#allocation2 + $0xb] sm:$0xff]  ;;  %v431_v30 = vmul.f32 %v718_v23, %v426_v24 }
  0x25   : > { %v439_v32 = vmul.f32 %v719_v27, %v434_v28 }
  0x26   : > { %v416_v29 = vadd.f32 %v415_v22, %v408_v25 }
  0x28   : > { %v424_v31 = vadd.f32 %v423_v26, %v416_v29 }
  0x2a   : > { %v432_v33 = vadd.f32 %v431_v30, %v424_v31 }
  0x2c   : > { %v440_v35 = vadd.f32 %v439_v32, %v432_v33 }
  0x2e   : > { %v448_v36 = vadd.f32 %v720_v34, %v440_v35 }
  0x30   : > { %v449_v37 = vsel %vm381_vm1, %v448_v36, 0.0 }
  0x31   : > { %450 = vadd.xlane.f32.xlu0 %v449_v37 }
  0xbe   : > { %v451_v38 = vpop.xlane.xlu0 %450 }
  0xbf   : > { %v452_v39 = vmul.f32 0.125, %v451_v38 }
  0xc1   : > { %v453_v40 = vsub.f32 %v448_v36, %v452_v39 }
  0xc3   : > { %v454_v41 = vmul.f32 %v453_v40, %v453_v40 }
  0xc5   : > { %v455_v42 = vsel %vm381_vm1, %v454_v41, 0.0 }
  0xc6   : > { %456 = vadd.xlane.f32.xlu0 %v455_v42 }
 0x153   : > { %v457_v46 = vpop.xlane.xlu0 %456 }
 0x154   : > { %v458_v47 = vmul.f32 0.125, %v457_v46 }
 0x156   : > { %v459_v48 = vadd.f32 1e-05, %v458_v47 }
 0x158   : > { %792 = vrsqrt.f32 %v459_v48 }
 0x162   : > { %v793_v49 = vpop.eup %792 }
 0x163   : > { %v461_v50 = vmul.f32 %v793_v49, %v453_v40 }
 0x165   : > { %v462_v51 = vpack.c.bf16 %v461_v50, %v461_v50 }
 0x167   : > { %737 = vmatmul.mubr.msk.bf16.vlgmr.msra.gmra.mrb[0].mxu0 %vm381_vm1, %v462_v51 }
 0x23a   : > { %v512_v55 = vpop.f32.mrb[0].mxu0 }
 0x23b   : > { %v513_v56 = vadd.f32 %v721_v54, %v512_v55  ;;  %v738_v57 = vpop.f32.mrb[1].mxu0 }
 0x23c   : > { %v515_v58 = vpop.f32.mrb[2].mxu0 }
 0x23d   : > { %v519_v59 = vmul.f32 0.70710677, %v513_v56  ;;  %v739_v60 = vpop.f32.mrb[3].mxu0  ;;  %v518_v62 = vmul.f32 0.5, %v513_v56 }
 0x23f   : > { %794 = verf.f32 %v519_v59 }
 0x249   : > { %v795_v61 = vpop.eup %794 }
 0x24a   : > { %v521_v63 = vadd.f32 1.0, %v795_v61 }
 0x24c   : > { %v522_v0 = vmul.f32 %v521_v63, %v518_v62 }
 0x24e   : > { %v523_v1 = vpack.c.bf16 %v522_v0, %v522_v0 }
 0x250   : > { %745 = vmatmul.mubr.msk.bf16.vlgmr.msra.gmra.mrb[0].mxu1 %vm547_vm4, %v523_v1 }
 0x323   : > { %v585_v3 = vpop.f32.mrb[0].mxu1 }
 0x324   : > { %v586_v4 = vadd.f32 %v723_v2, %v585_v3  ;;  %v746_v6 = vpop.f32.mrb[1].mxu1 }
 0x325   : > { %v588_v7 = vpop.f32.mrb[2].mxu1 }
 0x326   : > { %v591_v8 = vadd.f32 %v586_v4, %v924_v5  ;;  %v747_v9 = vpop.f32.mrb[3].mxu1 }
 0x328   : > { %592 = vst.msk [vmem:[%s370_s24] sm:$0xff] %vm381_vm1, %v591_v8 }
 0x329 PF: > { %s18_s9 = sadd.s32 1, %s834_s9   ;;  %s1003_s27 = smov %s826_s29 }
 0x32a   : > { %p15_p7 = scmp.ge.s32.totalorder %s18_s9, 6   ;;  %s1004_s28 = smov %s830_s30 }
 0x32b   : > { %s1005_s29 = smov %s1008_s10  ;;  %s1006_s30 = smov %s1012_s11 }
 0x32c   :  { %17 = sbr.rel (!%p15_p7) target bundleno = 3 (0x3), region = 85 }

</bundles_post_ra>
